<compile_context>
chip_gen: v5e
topology: v5e:2x2
jax: 0.10.0
libtpu: 0.0.40
codegen_flags: <defaults>
</compile_context>

<pallas_src>
import functools

import jax
import jax.numpy as jnp
from jax.experimental import pallas as pl
from jax.experimental.pallas import tpu as pltpu

NOISE_SIGMA = 0.1
KH = KW = 3


def _lane_roll(a, off):
    """a[:, l] <- a[:, (l + off) mod L] using two static lane slices + concat.

    Portable (interpret + Mosaic); on TPU this lowers to cheap lane shifts.
    Wrap-around columns are always boundary pixels that the tap mask zeroes.
    """
    if off == 0:
        return a
    s = off % a.shape[-1]
    return jnp.concatenate([a[:, s:], a[:, :s]], axis=-1)


def _conv_plus_noise_kernel(sigma, offsets, w_ref, m_ref, x_ref, z_ref, o_ref):
    """One grid step: B_tile images folded into the lane axis.

    w_ref : (9, C_out, C)   bf16  conv taps (VMEM-resident, constant block)
    m_ref : (9, T)          bf16  per-tap boundary masks (0/1), T = B_tile*H*W
    x_ref : (C, T)          bf16  channel-major, spatially flattened images
    z_ref : (C_out, T)      f32   standard-normal noise (randn_like)
    o_ref : (C_out, T)      f32   output block (lane-dense)
    """
    x = x_ref[...]            # (C, T) bf16
    w = w_ref[...]            # (9, C_out, C) bf16
    m = m_ref[...]            # (9, T) bf16

    acc = jnp.zeros(o_ref.shape, jnp.float32)        # f32 accumulator
    for tap, off in enumerate(offsets):              # 9 taps, statically unrolled
        if off == 0:                                  # center tap: no shift/mask
            xs = x
        else:
            xs = _lane_roll(x, off) * m[tap:tap + 1, :]
        # (C_out, C) @ (C, T) on the MXU, bf16 inputs, f32 accumulation.
        acc = acc + jnp.dot(w[tap], xs, preferred_element_type=jnp.float32)

    # A(x) + sigma * randn_like(A(x)) -- noise math kept in f32.
    o_ref[...] = (acc + sigma * z_ref[...]).astype(o_ref.dtype)


def _tap_masks(h, w):
    """(9, H*W) 0/1 masks: valid iff the shifted source pixel is in-image."""
    p = jnp.arange(h * w)
    hh = p // w
    ww = p % w
    masks = []
    for di in range(KH):
        for dj in range(KW):
            m = ((hh + di - 1 >= 0) & (hh + di - 1 < h) &
                 (ww + dj - 1 >= 0) & (ww + dj - 1 < w))
            masks.append(m)
    return jnp.stack(masks).astype(jnp.bfloat16)


def _pick_batch_tile(n_imgs, hw, c, c_out, budget_bytes=4 << 20):
    """Largest batch tile (divisor of N) whose per-step blocks fit the budget
    and keep the lane dim a multiple of 128 (or cover the full array)."""
    per_img = hw * (c * 2 + 9 * 2 + c_out * 4 + c_out * 4)   # x + mask + z + out
    bt = max(1, min(n_imgs, budget_bytes // max(per_img, 1)))
    while bt > 1 and n_imgs % bt != 0:
        bt -= 1
    if (bt * hw) % 128 != 0 and bt != n_imgs:
        bt = n_imgs   # fall back to a single full block (full-dim exemption)
    return bt


def operator_plus_noise(x, conv_weight, noise_sigma, noise_key):
    """x: (N, C, H, W) f32, conv_weight: (C_out, C, 3, 3) f32."""
    n, c, h, w = x.shape
    c_out = conv_weight.shape[0]
    hw = h * w
    L = n * hw

    # ---- host-side layout plumbing (no im2col, no 9x inflation) ------------
    # channel-major, spatially flattened, bf16 for the MXU operands.
    x_cf = x.transpose(1, 0, 2, 3).reshape(c, L).astype(jnp.bfloat16)
    # (9, C_out, C) taps, tap index = di*3 + dj.
    w_taps = conv_weight.transpose(2, 3, 0, 1).reshape(
        KH * KW, c_out, c).astype(jnp.bfloat16)
    offsets = tuple((di - 1) * w + (dj - 1)
                    for di in range(KH) for dj in range(KW))

    bt = _pick_batch_tile(n, hw, c, c_out)
    T = bt * hw                                   # lane width per grid step
    masks = jnp.tile(_tap_masks(h, w), (1, bt))   # (9, T), periodic in H*W

    # Noise: exact randn_like(A(x)) semantics, generated host-side in f32.
    noise = jax.random.normal(noise_key, (n, c_out, h, w), dtype=jnp.float32)
    noise_cf = noise.transpose(1, 0, 2, 3).reshape(c_out, L)

    out_flat = pl.pallas_call(
        functools.partial(_conv_plus_noise_kernel, float(noise_sigma), offsets),
        out_shape=jax.ShapeDtypeStruct((c_out, L), jnp.float32),
        grid=(L // T,),
        in_specs=[
            # constant block index -> weights/masks stay resident in VMEM
            pl.BlockSpec((KH * KW, c_out, c), lambda i: (0, 0, 0)),
            pl.BlockSpec((KH * KW, T), lambda i: (0, 0)),
            pl.BlockSpec((c, T), lambda i: (0, i)),
            pl.BlockSpec((c_out, T), lambda i: (0, i)),
        ],
        out_specs=pl.BlockSpec((c_out, T), lambda i: (0, i)),
        compiler_params=pltpu.CompilerParams(
            dimension_semantics=("parallel",)),   # independent image tiles
    )(w_taps, masks, x_cf, noise_cf)

    return out_flat.reshape(c_out, n, h, w).transpose(1, 0, 2, 3)


if __name__ == "__main__":
    key = jax.random.PRNGKey(0)
    kx, kw_, kn = jax.random.split(key, 3)

    # Small shapes consistent with the module's forward: NCHW image batch.
    x = jax.random.normal(kx, (2, 4, 16, 16), dtype=jnp.float32)
    # Deterministic synthetic operator weights (Conv2d(4, 4, 3, padding=1)).
    conv_w = jax.random.normal(kw_, (4, 4, KH, KW), dtype=jnp.float32) * 0.1

    y = operator_plus_noise(x, conv_w, NOISE_SIGMA, noise_key=kn)
    jax.block_until_ready(y)

    # Reference: same bf16-rounded operands, XLA conv, same noise draw.
    xb = x.astype(jnp.bfloat16).astype(jnp.float32)
    wb = conv_w.astype(jnp.bfloat16).astype(jnp.float32)
    ref = jax.lax.conv_general_dilated(
        xb, wb, window_strides=(1, 1), padding="SAME",
        dimension_numbers=("NCHW", "OIHW", "NCHW"))
    ref = ref + NOISE_SIGMA * jax.random.normal(kn, (2, 4, 16, 16),
                                                dtype=jnp.float32)

    assert y.shape == (2, 4, 16, 16) and y.dtype == jnp.float32
    assert bool(jnp.all(jnp.isfinite(y)))
    err = float(jnp.max(jnp.abs(y - ref)))
    assert err < 1e-2, f"max abs err vs reference = {err}"
    print("KERNEL_OK")
</pallas_src>

<mosaic_0001>
module attributes {stable_mosaic.version = 11 : i64} {
  func.func @_conv_plus_noise_kernel(%arg0: i32, %arg1: memref<9x4x4xbf16, #tpu.memory_space<vmem>>, %arg2: memref<9x512xbf16, #tpu.memory_space<vmem>>, %arg3: memref<4x512xbf16, #tpu.memory_space<vmem>>, %arg4: memref<4x512xf32, #tpu.memory_space<vmem>>, %arg5: memref<4x512xf32, #tpu.memory_space<vmem>>) attributes {dimension_semantics = [#tpu.dimension_semantics<parallel>], iteration_bounds = array<i64: 1>, scalar_prefetch = 0 : i64, scratch_operands = 0 : i64, tpu.core_type = #tpu.core_type<tc>, window_params = [{pipeline_mode = #tpu.pipeline_mode<synchronous>, transform_indices = @transform_0, window_bounds = array<i64: 9, 4, 4>}, {pipeline_mode = #tpu.pipeline_mode<synchronous>, transform_indices = @transform_1, window_bounds = array<i64: 9, 512>}, {transform_indices = @transform_2, window_bounds = array<i64: 4, 512>}, {transform_indices = @transform_3, window_bounds = array<i64: 4, 512>}, {transform_indices = @transform_4, window_bounds = array<i64: 4, 512>}]} {
    %c0 = arith.constant 0 : index
    %c0_0 = arith.constant 0 : index
    %0 = vector.load %arg3[%c0, %c0_0] : memref<4x512xbf16, #tpu.memory_space<vmem>>, vector<4x512xbf16>
    %c0_1 = arith.constant 0 : index
    %c0_2 = arith.constant 0 : index
    %c0_3 = arith.constant 0 : index
    %1 = vector.load %arg1[%c0_1, %c0_2, %c0_3] : memref<9x4x4xbf16, #tpu.memory_space<vmem>>, vector<9x4x4xbf16>
    %c0_4 = arith.constant 0 : index
    %c0_5 = arith.constant 0 : index
    %2 = vector.load %arg2[%c0_4, %c0_5] : memref<9x512xbf16, #tpu.memory_space<vmem>>, vector<9x512xbf16>
    %cst = arith.constant 0.000000e+00 : f32
    %3 = vector.broadcast %cst : f32 to vector<4x512xf32>
    %4 = vector.extract_strided_slice %0 {offsets = [0, 495], sizes = [4, 17], strides = [1, 1]} : vector<4x512xbf16> to vector<4x17xbf16>
    %5 = vector.extract_strided_slice %0 {offsets = [0, 0], sizes = [4, 495], strides = [1, 1]} : vector<4x512xbf16> to vector<4x495xbf16>
    %6 = tpu.concatenate %4, %5 in 1 : vector<4x17xbf16>, vector<4x495xbf16> -> vector<4x512xbf16>
    %7 = vector.extract_strided_slice %2 {offsets = [0, 0], sizes = [1, 512], strides = [1, 1]} : vector<9x512xbf16> to vector<1x512xbf16>
    %8 = vector.broadcast %7 : vector<1x512xbf16> to vector<4x512xbf16>
    %9 = arith.mulf %6, %8 : vector<4x512xbf16>
    %10 = vector.extract_strided_slice %1 {offsets = [0, 0, 0], sizes = [1, 4, 4], strides = [1, 1, 1]} : vector<9x4x4xbf16> to vector<1x4x4xbf16>
    %11 = vector.shape_cast %10 : vector<1x4x4xbf16> to vector<4x4xbf16>
    %cst_6 = arith.constant dense<0.000000e+00> : vector<4x512xf32>
    %12 = tpu.matmul %11, %9, %cst_6 {dimension_numbers = #tpu.dot_dimension_numbers<[1], [0], [0], [1], [0, 0, 1, 1], [], []>} : vector<4x4xbf16>, vector<4x512xbf16>, vector<4x512xf32> -> vector<4x512xf32>
    %13 = arith.addf %3, %12 : vector<4x512xf32>
    %14 = vector.extract_strided_slice %0 {offsets = [0, 496], sizes = [4, 16], strides = [1, 1]} : vector<4x512xbf16> to vector<4x16xbf16>
    %15 = vector.extract_strided_slice %0 {offsets = [0, 0], sizes = [4, 496], strides = [1, 1]} : vector<4x512xbf16> to vector<4x496xbf16>
    %16 = tpu.concatenate %14, %15 in 1 : vector<4x16xbf16>, vector<4x496xbf16> -> vector<4x512xbf16>
    %17 = vector.extract_strided_slice %2 {offsets = [1, 0], sizes = [1, 512], strides = [1, 1]} : vector<9x512xbf16> to vector<1x512xbf16>
    %18 = vector.broadcast %17 : vector<1x512xbf16> to vector<4x512xbf16>
    %19 = arith.mulf %16, %18 : vector<4x512xbf16>
    %20 = vector.extract_strided_slice %1 {offsets = [1, 0, 0], sizes = [1, 4, 4], strides = [1, 1, 1]} : vector<9x4x4xbf16> to vector<1x4x4xbf16>
    %21 = vector.shape_cast %20 : vector<1x4x4xbf16> to vector<4x4xbf16>
    %cst_7 = arith.constant dense<0.000000e+00> : vector<4x512xf32>
    %22 = tpu.matmul %21, %19, %cst_7 {dimension_numbers = #tpu.dot_dimension_numbers<[1], [0], [0], [1], [0, 0, 1, 1], [], []>} : vector<4x4xbf16>, vector<4x512xbf16>, vector<4x512xf32> -> vector<4x512xf32>
    %23 = arith.addf %13, %22 : vector<4x512xf32>
    %24 = vector.extract_strided_slice %0 {offsets = [0, 497], sizes = [4, 15], strides = [1, 1]} : vector<4x512xbf16> to vector<4x15xbf16>
    %25 = vector.extract_strided_slice %0 {offsets = [0, 0], sizes = [4, 497], strides = [1, 1]} : vector<4x512xbf16> to vector<4x497xbf16>
    %26 = tpu.concatenate %24, %25 in 1 : vector<4x15xbf16>, vector<4x497xbf16> -> vector<4x512xbf16>
    %27 = vector.extract_strided_slice %2 {offsets = [2, 0], sizes = [1, 512], strides = [1, 1]} : vector<9x512xbf16> to vector<1x512xbf16>
    %28 = vector.broadcast %27 : vector<1x512xbf16> to vector<4x512xbf16>
    %29 = arith.mulf %26, %28 : vector<4x512xbf16>
    %30 = vector.extract_strided_slice %1 {offsets = [2, 0, 0], sizes = [1, 4, 4], strides = [1, 1, 1]} : vector<9x4x4xbf16> to vector<1x4x4xbf16>
    %31 = vector.shape_cast %30 : vector<1x4x4xbf16> to vector<4x4xbf16>
    %cst_8 = arith.constant dense<0.000000e+00> : vector<4x512xf32>
    %32 = tpu.matmul %31, %29, %cst_8 {dimension_numbers = #tpu.dot_dimension_numbers<[1], [0], [0], [1], [0, 0, 1, 1], [], []>} : vector<4x4xbf16>, vector<4x512xbf16>, vector<4x512xf32> -> vector<4x512xf32>
    %33 = arith.addf %23, %32 : vector<4x512xf32>
    %34 = vector.extract_strided_slice %0 {offsets = [0, 511], sizes = [4, 1], strides = [1, 1]} : vector<4x512xbf16> to vector<4x1xbf16>
    %35 = vector.extract_strided_slice %0 {offsets = [0, 0], sizes = [4, 511], strides = [1, 1]} : vector<4x512xbf16> to vector<4x511xbf16>
    %36 = tpu.concatenate %34, %35 in 1 : vector<4x1xbf16>, vector<4x511xbf16> -> vector<4x512xbf16>
    %37 = vector.extract_strided_slice %2 {offsets = [3, 0], sizes = [1, 512], strides = [1, 1]} : vector<9x512xbf16> to vector<1x512xbf16>
    %38 = vector.broadcast %37 : vector<1x512xbf16> to vector<4x512xbf16>
    %39 = arith.mulf %36, %38 : vector<4x512xbf16>
    %40 = vector.extract_strided_slice %1 {offsets = [3, 0, 0], sizes = [1, 4, 4], strides = [1, 1, 1]} : vector<9x4x4xbf16> to vector<1x4x4xbf16>
    %41 = vector.shape_cast %40 : vector<1x4x4xbf16> to vector<4x4xbf16>
    %cst_9 = arith.constant dense<0.000000e+00> : vector<4x512xf32>
    %42 = tpu.matmul %41, %39, %cst_9 {dimension_numbers = #tpu.dot_dimension_numbers<[1], [0], [0], [1], [0, 0, 1, 1], [], []>} : vector<4x4xbf16>, vector<4x512xbf16>, vector<4x512xf32> -> vector<4x512xf32>
    %43 = arith.addf %33, %42 : vector<4x512xf32>
    %44 = vector.extract_strided_slice %1 {offsets = [4, 0, 0], sizes = [1, 4, 4], strides = [1, 1, 1]} : vector<9x4x4xbf16> to vector<1x4x4xbf16>
    %45 = vector.shape_cast %44 : vector<1x4x4xbf16> to vector<4x4xbf16>
    %cst_10 = arith.constant dense<0.000000e+00> : vector<4x512xf32>
    %46 = tpu.matmul %45, %0, %cst_10 {dimension_numbers = #tpu.dot_dimension_numbers<[1], [0], [0], [1], [0, 0, 1, 1], [], []>} : vector<4x4xbf16>, vector<4x512xbf16>, vector<4x512xf32> -> vector<4x512xf32>
    %47 = arith.addf %43, %46 : vector<4x512xf32>
    %48 = vector.extract_strided_slice %0 {offsets = [0, 1], sizes = [4, 511], strides = [1, 1]} : vector<4x512xbf16> to vector<4x511xbf16>
    %49 = vector.extract_strided_slice %0 {offsets = [0, 0], sizes = [4, 1], strides = [1, 1]} : vector<4x512xbf16> to vector<4x1xbf16>
    %50 = tpu.concatenate %48, %49 in 1 : vector<4x511xbf16>, vector<4x1xbf16> -> vector<4x512xbf16>
    %51 = vector.extract_strided_slice %2 {offsets = [5, 0], sizes = [1, 512], strides = [1, 1]} : vector<9x512xbf16> to vector<1x512xbf16>
    %52 = vector.broadcast %51 : vector<1x512xbf16> to vector<4x512xbf16>
    %53 = arith.mulf %50, %52 : vector<4x512xbf16>
    %54 = vector.extract_strided_slice %1 {offsets = [5, 0, 0], sizes = [1, 4, 4], strides = [1, 1, 1]} : vector<9x4x4xbf16> to vector<1x4x4xbf16>
    %55 = vector.shape_cast %54 : vector<1x4x4xbf16> to vector<4x4xbf16>
    %cst_11 = arith.constant dense<0.000000e+00> : vector<4x512xf32>
    %56 = tpu.matmul %55, %53, %cst_11 {dimension_numbers = #tpu.dot_dimension_numbers<[1], [0], [0], [1], [0, 0, 1, 1], [], []>} : vector<4x4xbf16>, vector<4x512xbf16>, vector<4x512xf32> -> vector<4x512xf32>
    %57 = arith.addf %47, %56 : vector<4x512xf32>
    %58 = vector.extract_strided_slice %0 {offsets = [0, 15], sizes = [4, 497], strides = [1, 1]} : vector<4x512xbf16> to vector<4x497xbf16>
    %59 = vector.extract_strided_slice %0 {offsets = [0, 0], sizes = [4, 15], strides = [1, 1]} : vector<4x512xbf16> to vector<4x15xbf16>
    %60 = tpu.concatenate %58, %59 in 1 : vector<4x497xbf16>, vector<4x15xbf16> -> vector<4x512xbf16>
    %61 = vector.extract_strided_slice %2 {offsets = [6, 0], sizes = [1, 512], strides = [1, 1]} : vector<9x512xbf16> to vector<1x512xbf16>
    %62 = vector.broadcast %61 : vector<1x512xbf16> to vector<4x512xbf16>
    %63 = arith.mulf %60, %62 : vector<4x512xbf16>
    %64 = vector.extract_strided_slice %1 {offsets = [6, 0, 0], sizes = [1, 4, 4], strides = [1, 1, 1]} : vector<9x4x4xbf16> to vector<1x4x4xbf16>
    %65 = vector.shape_cast %64 : vector<1x4x4xbf16> to vector<4x4xbf16>
    %cst_12 = arith.constant dense<0.000000e+00> : vector<4x512xf32>
    %66 = tpu.matmul %65, %63, %cst_12 {dimension_numbers = #tpu.dot_dimension_numbers<[1], [0], [0], [1], [0, 0, 1, 1], [], []>} : vector<4x4xbf16>, vector<4x512xbf16>, vector<4x512xf32> -> vector<4x512xf32>
    %67 = arith.addf %57, %66 : vector<4x512xf32>
    %68 = vector.extract_strided_slice %0 {offsets = [0, 16], sizes = [4, 496], strides = [1, 1]} : vector<4x512xbf16> to vector<4x496xbf16>
    %69 = vector.extract_strided_slice %0 {offsets = [0, 0], sizes = [4, 16], strides = [1, 1]} : vector<4x512xbf16> to vector<4x16xbf16>
    %70 = tpu.concatenate %68, %69 in 1 : vector<4x496xbf16>, vector<4x16xbf16> -> vector<4x512xbf16>
    %71 = vector.extract_strided_slice %2 {offsets = [7, 0], sizes = [1, 512], strides = [1, 1]} : vector<9x512xbf16> to vector<1x512xbf16>
    %72 = vector.broadcast %71 : vector<1x512xbf16> to vector<4x512xbf16>
    %73 = arith.mulf %70, %72 : vector<4x512xbf16>
    %74 = vector.extract_strided_slice %1 {offsets = [7, 0, 0], sizes = [1, 4, 4], strides = [1, 1, 1]} : vector<9x4x4xbf16> to vector<1x4x4xbf16>
    %75 = vector.shape_cast %74 : vector<1x4x4xbf16> to vector<4x4xbf16>
    %cst_13 = arith.constant dense<0.000000e+00> : vector<4x512xf32>
    %76 = tpu.matmul %75, %73, %cst_13 {dimension_numbers = #tpu.dot_dimension_numbers<[1], [0], [0], [1], [0, 0, 1, 1], [], []>} : vector<4x4xbf16>, vector<4x512xbf16>, vector<4x512xf32> -> vector<4x512xf32>
    %77 = arith.addf %67, %76 : vector<4x512xf32>
    %78 = vector.extract_strided_slice %0 {offsets = [0, 17], sizes = [4, 495], strides = [1, 1]} : vector<4x512xbf16> to vector<4x495xbf16>
    %79 = vector.extract_strided_slice %0 {offsets = [0, 0], sizes = [4, 17], strides = [1, 1]} : vector<4x512xbf16> to vector<4x17xbf16>
    %80 = tpu.concatenate %78, %79 in 1 : vector<4x495xbf16>, vector<4x17xbf16> -> vector<4x512xbf16>
    %81 = vector.extract_strided_slice %2 {offsets = [8, 0], sizes = [1, 512], strides = [1, 1]} : vector<9x512xbf16> to vector<1x512xbf16>
    %82 = vector.broadcast %81 : vector<1x512xbf16> to vector<4x512xbf16>
    %83 = arith.mulf %80, %82 : vector<4x512xbf16>
    %84 = vector.extract_strided_slice %1 {offsets = [8, 0, 0], sizes = [1, 4, 4], strides = [1, 1, 1]} : vector<9x4x4xbf16> to vector<1x4x4xbf16>
    %85 = vector.shape_cast %84 : vector<1x4x4xbf16> to vector<4x4xbf16>
    %cst_14 = arith.constant dense<0.000000e+00> : vector<4x512xf32>
    %86 = tpu.matmul %85, %83, %cst_14 {dimension_numbers = #tpu.dot_dimension_numbers<[1], [0], [0], [1], [0, 0, 1, 1], [], []>} : vector<4x4xbf16>, vector<4x512xbf16>, vector<4x512xf32> -> vector<4x512xf32>
    %87 = arith.addf %77, %86 : vector<4x512xf32>
    %c0_15 = arith.constant 0 : index
    %c0_16 = arith.constant 0 : index
    %88 = vector.load %arg4[%c0_15, %c0_16] : memref<4x512xf32, #tpu.memory_space<vmem>>, vector<4x512xf32>
    %cst_17 = arith.constant 1.000000e-01 : f32
    %89 = vector.broadcast %cst_17 : f32 to vector<4x512xf32>
    %90 = arith.mulf %89, %88 : vector<4x512xf32>
    %91 = arith.addf %87, %90 : vector<4x512xf32>
    %c0_18 = arith.constant 0 : index
    %c0_19 = arith.constant 0 : index
    %92 = vector.load %arg5[%c0_18, %c0_19] : memref<4x512xf32, #tpu.memory_space<vmem>>, vector<4x512xf32>
    tpu.vector_store %arg5[%c0_18, %c0_19], %91 {strides = array<i32>} : memref<4x512xf32, #tpu.memory_space<vmem>>, vector<4x512xf32>,
    return
  }
  func.func @transform_0(%arg0: i32) -> (i32, i32, i32) {
    %c0_i32 = arith.constant 0 : i32
    %c0_i32_0 = arith.constant 0 : i32
    %c0_i32_1 = arith.constant 0 : i32
    %c0_i32_2 = arith.constant 0 : i32
    return %c0_i32, %c0_i32_0, %c0_i32_1 : i32, i32, i32
  }
  func.func @transform_1(%arg0: i32) -> (i32, i32) {
    %c0_i32 = arith.constant 0 : i32
    %c0_i32_0 = arith.constant 0 : i32
    %c0_i32_1 = arith.constant 0 : i32
    return %c0_i32, %c0_i32_0 : i32, i32
  }
  func.func @transform_2(%arg0: i32) -> (i32, i32) {
    %c0_i32 = arith.constant 0 : i32
    %c0_i32_0 = arith.constant 0 : i32
    return %c0_i32, %arg0 : i32, i32
  }
  func.func @transform_3(%arg0: i32) -> (i32, i32) {
    %c0_i32 = arith.constant 0 : i32
    %c0_i32_0 = arith.constant 0 : i32
    return %c0_i32, %arg0 : i32, i32
  }
  func.func @transform_4(%arg0: i32) -> (i32, i32) {
    %c0_i32 = arith.constant 0 : i32
    %c0_i32_0 = arith.constant 0 : i32
    return %c0_i32, %arg0 : i32, i32
  }
}

</mosaic_0001>

<bundles_post_ra>
// kernel: tpu_custom_call.1
= control target key start
LH: loop header
LB: loop body
LE: loop exit
PB: predicated region body
PF: predicated region fallthrough
CT: control target
= control target key end

     0   :  { %9 = vsyncpa [#allocation3], 0  ;;  %s1594_s0 = inlined_call_operand.vmem [shape: bf16[9,4,4], index: 0, kind: input, shape index: {}]   ;;  %s1595_s1 = inlined_call_operand.hbm [shape: bf16[9,512], index: 1, kind: input, shape index: {}]   ;;  %s1596_s2 = inlined_call_operand.vmem [shape: bf16[4,512], index: 2, kind: input, shape index: {}]   ;;  %s1597_s3 = inlined_call_operand.vmem [shape: f32[4,512], index: 3, kind: input, shape index: {}]   ;;  %s1598_s4 = inlined_call_operand.hbm [shape: f32[4,512], index: 4, kind: output, shape index: {}]  }
   0x1   :  { %10 = vsyncpa [#allocation4], 0  ;;  %s17_s17 = sshll.u32 %s1595_s1, 4  ;;  %s1322_s18 = smov [#allocation2]   ;;  %s18_s17 = int_to_ptr.hbm [resolvable:$true] %s17_s17 }
   0x2   :  { %s19_s19 = sshll.u32 %s1322_s18, 4  ;;  %s1323_s20 = smov 256   ;;  %s20_s19 = int_to_ptr.vmem [resolvable:$true] %s19_s19 }
   0x3   :  { %s1324_s21 = smov 16  }
   0x4   :  { %25 = dma.hbm_to_vmem [thread:$0]  %s18_s17, 512, %s20_s19, [#allocation3], %s1323_s20, %s1323_s20, %s1324_s21  }
   0x5   :  { %1318 = dma.done.wait [#allocation3], 512  }
   0x6   :  { %1319 = vsyncadd [#allocation3], 4294966784  ;;  %v1364_v0 = vld [vmem:[%s1596_s2] sm:$0xff]  ;;  %s1325_s1 = smov 17   ;;  %s1326_s2 = smov 15   ;;  %v46_v39 = vld [vmem:[#allocation2 + $0x8] sm:$0xff] }
   0x7   :  { %50 = vst [vmem:[#allocation1] ss:$4 sm:$0xff] %v1364_v0  ;;  %s1327_s24 = smov 1   ;;  %s1328_s25 = smov 127   ;;  %v88_v40 = vunpack.c.l.b16 %v46_v39  ;;  %v45_v43 = vld [vmem:[#allocation2] sm:$0xff]  ;;  %v89_v50 = vunpack.c.h.b16 %v46_v39  ;;  %vm148_vm0 = vcmask 130048  }
   0x8   :  { %s1329_s26 = smov 113   ;;  %s1330_s27 = smov 112   ;;  %v86_v46 = vunpack.c.l.b16 %v45_v43  ;;  %v87_v49 = vunpack.c.h.b16 %v45_v43  ;;  %vm196_vm1 = vcmask 1041408   ;;  %vm192_vm2 = vcmask 31744  }
   0x9   :  { %v92_v42 = vpack.c.b16 %v88_v40, %v88_v40  ;;  %s1331_s28 = smov 111   ;;  %v93_v56 = vpack.c.b16 %v89_v50, %v89_v50  ;;  %vm72_vm3 = vcmask 138240   ;;  %vm350_vm4 = vcmask 121856  }
   0xa   :  { %v90_v53 = vpack.c.b16 %v86_v46, %v86_v46  ;;  %v91_v55 = vpack.c.b16 %v87_v49, %v87_v49  ;;  %vm475_vm5 = vcmask 7168   ;;  %vm667_vm6 = vcmask 1039360  }
   0xb   :  { %v168_v45 = vshrl.u32 %v92_v42, 16  ;;  %v172_v61 = vshrl.u32 %v93_v56, 16  ;;  %vm792_vm7 = vcmask 924672   ;;  %vm917_vm8 = vcmask 916480  }
   0xc   :  { %v160_v58 = vshrl.u32 %v90_v53, 16  ;;  %v164_v60 = vshrl.u32 %v91_v55, 16  ;;  %vm1042_vm9 = vcmask 908288   ;;  %vm1199_vm10 = vcmask 1043456  }
   0xd   :  { %v1392_v54 = vpack.i.b16 %v168_v45, %v168_v45  ;;  %v1430_v45 = vpack.i.b16 %v90_v53, %v90_v53 }
   0xe   :  { %v51_v1 = vld.sshfl [vmem:[#allocation1 + $0x18] sm:$0xff pattern:$0x73625140]  ;;  %v1400_v63 = vpack.i.b16 %v160_v58, %v160_v58 }
   0xf   :  { %55 = vst [vmem:[#allocation1] ss:$4 sm:$0xff] %v1364_v0  ;;  %v171_v59 = vperm.slane %v1392_v54, 0 }
  0x16   :  { %v56_v2 = vld.sshfl [vmem:[#allocation1] sm:$0xff pattern:$0x73625140]  ;;  %v58_v3 = vld.sshfl [vmem:[#allocation1 + $0x8] sm:$0xff pattern:$0x73625140] }
  0x17   :  { %v60_v4 = vld.sshfl [vmem:[#allocation1 + $0x10] sm:$0xff pattern:$0x73625140]  ;;  %v62_v5 = vld.sshfl [vmem:[#allocation1 + $0x18] sm:$0xff pattern:$0x73625140] }
  0x18   :  { %126 = vst [vmem:[#allocation1] ss:$4 sm:$0xff] %v1364_v0 }
  0x1f   :  { %v127_v6 = vld.sshfl [vmem:[#allocation1 + $0x18] sm:$0xff pattern:$0x73625140] }
  0x20   :  { %131 = vst [vmem:[#allocation1] ss:$4 sm:$0xff] %v1364_v0  ;;  %129 = vrot.lane.b32.xlu2 %v127_v6, %s1324_s21 }
  0x27   :  { %v136_v7 = vld.sshfl [vmem:[#allocation1 + $0x10] sm:$0xff pattern:$0x73625140]  ;;  %v134_v8 = vld.sshfl [vmem:[#allocation1 + $0x8] sm:$0xff pattern:$0x73625140] }
  0x28   :  { %144 = vrot.lane.b32.xlu0 %v136_v7, %s1324_s21  ;;  %142 = vrot.lane.b32.xlu1 %v134_v8, %s1324_s21  ;;  %v138_v9 = vld.sshfl [vmem:[#allocation1 + $0x18] sm:$0xff pattern:$0x73625140]  ;;  %v132_v10 = vld.sshfl [vmem:[#allocation1] sm:$0xff pattern:$0x73625140] }
  0x29   :  { %328 = vst [vmem:[#allocation1] ss:$4 sm:$0xff] %v1364_v0  ;;  %68 = vrot.lane.b32.xlu2 %v60_v4, %s1325_s1  ;;  %v1404_v4 = vpack.i.b16 %v172_v61, %v172_v61  ;;  %v163_v7 = vperm.slane %v1400_v63, 0 }
  0x30   :  { %146 = vrot.lane.b32.xlu0 %v138_v9, %s1324_s21  ;;  %140 = vrot.lane.b32.xlu1 %v132_v10, %s1324_s21  ;;  %v329_v11 = vld.sshfl [vmem:[#allocation1 + $0x18] sm:$0xff pattern:$0x73625140]  ;;  %v175_v10 = vperm.slane %v1404_v4, 0 }
  0x31   :  { %333 = vst [vmem:[#allocation1] ss:$4 sm:$0xff] %v1364_v0  ;;  %64 = vrot.lane.b32.xlu2 %v56_v2, %s1325_s1  ;;  %v182_v2 = vunpack.c.l.bf16 %v171_v59 }
  0x38   :  { %70 = vrot.lane.b32.xlu0 %v62_v5, %s1325_s1  ;;  %66 = vrot.lane.b32.xlu1 %v58_v3, %s1325_s1  ;;  %v338_v12 = vld.sshfl [vmem:[#allocation1 + $0x10] sm:$0xff pattern:$0x73625140]  ;;  %v340_v13 = vld.sshfl [vmem:[#allocation1 + $0x18] sm:$0xff pattern:$0x73625140]  ;;  %v1402_v3 = vpack.i.b16 %v164_v60, %v164_v60 }
  0x39   :  { %v336_v14 = vld.sshfl [vmem:[#allocation1 + $0x8] sm:$0xff pattern:$0x73625140]  ;;  %v334_v15 = vld.sshfl [vmem:[#allocation1] sm:$0xff pattern:$0x73625140]  ;;  %348 = vrot.lane.b32.xlu2 %v340_v13, %s1326_s2  ;;  %v180_v13 = vunpack.c.l.bf16 %v163_v7 }
  0x3a   :  { %453 = vst [vmem:[#allocation1] ss:$4 sm:$0xff] %v1364_v0  ;;  %v167_v9 = vperm.slane %v1402_v3, 0  ;;  %v97_v60 = vperm.slane %v1430_v45, 0 }
  0x40   :  { %53 = vrot.lane.b32.xlu0 %v51_v1, %s1325_s1  ;;  %346 = vrot.lane.b32.xlu1 %v338_v12, %s1326_s2 }
  0x41   :  { %v454_v16 = vld.sshfl [vmem:[#allocation1 + $0x18] sm:$0xff pattern:$0x73625140]  ;;  %331 = vrot.lane.b32.xlu2 %v329_v11, %s1326_s2 }
  0x42   :  { %458 = vst [vmem:[#allocation1] ss:$4 sm:$0xff] %v1364_v0 }
  0x48   :  { %344 = vrot.lane.b32.xlu0 %v336_v14, %s1326_s2  ;;  %342 = vrot.lane.b32.xlu1 %v334_v15, %s1326_s2  ;;  %v1413_v14 = vpack.i.b16 %v92_v42, %v92_v42  ;;  %v1415_v15 = vpack.i.b16 %v93_v56, %v93_v56 }
  0x49   :  { %v463_v17 = vld.sshfl [vmem:[#allocation1 + $0x10] sm:$0xff pattern:$0x73625140]  ;;  %v465_v18 = vld.sshfl [vmem:[#allocation1 + $0x18] sm:$0xff pattern:$0x73625140] }
  0x4a   :  { %v459_v19 = vld.sshfl [vmem:[#allocation1] sm:$0xff pattern:$0x73625140]  ;;  %v461_v20 = vld.sshfl [vmem:[#allocation1 + $0x8] sm:$0xff pattern:$0x73625140] }
  0x4b   :  { %469 = vrot.lane.b32.xlu2 %v461_v20, %s1327_s24  ;;  %578 = vst [vmem:[#allocation1] ss:$4 sm:$0xff] %v1364_v0  ;;  %v183_v20 = vunpack.c.l.bf16 %v175_v10 }
  0x50   :  { %471 = vrot.lane.b32.xlu0 %v463_v17, %s1327_s24  ;;  %473 = vrot.lane.b32.xlu1 %v465_v18, %s1327_s24 }
  0x52   :  { %v1375_v21 = vld.sshfl [vmem:[#allocation1] sm:$0xff pattern:$0x73625140]  ;;  %v1377_v22 = vld.sshfl [vmem:[#allocation1 + $0x8] sm:$0xff pattern:$0x73625140] }
  0x53   :  { %v1379_v23 = vld.sshfl [vmem:[#allocation1 + $0x10] sm:$0xff pattern:$0x73625140]  ;;  %v1381_v24 = vld.sshfl [vmem:[#allocation1 + $0x18] sm:$0xff pattern:$0x73625140] }
  0x54   :  { %650 = vst [vmem:[#allocation1] ss:$4 sm:$0xff] %v1364_v0 }
  0x58   :  { %467 = vrot.lane.b32.xlu0 %v459_v19, %s1327_s24  ;;  %456 = vrot.lane.b32.xlu1 %v454_v16, %s1327_s24  ;;  %v181_v19 = vunpack.c.l.bf16 %v167_v9 }
  0x5b   :  { %v655_v25 = vld.sshfl [vmem:[#allocation1 + $0x10] sm:$0xff pattern:$0x73625140]  ;;  %v651_v26 = vld.sshfl [vmem:[#allocation1] sm:$0xff pattern:$0x73625140] }
  0x5c   :  { %v653_v27 = vld.sshfl [vmem:[#allocation1 + $0x8] sm:$0xff pattern:$0x73625140]  ;;  %v657_v28 = vld.sshfl [vmem:[#allocation1 + $0x18] sm:$0xff pattern:$0x73625140] }
  0x5d   :  { %674 = vst [vmem:[#allocation1] ss:$4 sm:$0xff] %v1364_v0  ;;  %665 = vrot.lane.b32.xlu2 %v657_v28, %s1328_s25 }
  0x60   :  { %663 = vrot.lane.b32.xlu1 %v655_v25, %s1328_s25  ;;  %v1418_v25 = vpack.i.b16 %v91_v55, %v91_v55 }
  0x64   :  { %v675_v29 = vld.sshfl [vmem:[#allocation1] sm:$0xff pattern:$0x73625140] }
  0x65   :  { %677 = vrot.lane.b32.xlu0 %v675_v29, %s1328_s25  ;;  %775 = vst [vmem:[#allocation1] ss:$4 sm:$0xff] %v1364_v0  ;;  %661 = vrot.lane.b32.xlu2 %v653_v27, %s1328_s25  ;;  %v37_v29 = vld [vmem:[%s1594_s0 + $0x2] sm:$0x3] }
  0x6c   :  { %v782_v30 = vld.sshfl [vmem:[#allocation1 + $0x18] sm:$0xff pattern:$0x73625140]  ;;  %v780_v31 = vld.sshfl [vmem:[#allocation1 + $0x10] sm:$0xff pattern:$0x73625140] }
  0x6d   :  { %659 = vrot.lane.b32.xlu0 %v651_v26, %s1328_s25  ;;  %790 = vrot.lane.b32.xlu1 %v782_v30, %s1329_s26  ;;  %v778_v32 = vld.sshfl [vmem:[#allocation1 + $0x8] sm:$0xff pattern:$0x73625140]  ;;  %v776_v33 = vld.sshfl [vmem:[#allocation1] sm:$0xff pattern:$0x73625140] }
  0x6e   :  { %799 = vst [vmem:[#allocation1] ss:$4 sm:$0xff] %v1364_v0  ;;  %s1213_s25 = sshll.u32 %s1598_s4, 4  ;;  %s1214_s25 = int_to_ptr.hbm [resolvable:$true] %s1213_s25 }
  0x75   :  { %788 = vrot.lane.b32.xlu0 %v780_v31, %s1329_s26  ;;  %786 = vrot.lane.b32.xlu1 %v778_v32, %s1329_s26  ;;  %v800_v34 = vld.sshfl [vmem:[#allocation1] sm:$0xff pattern:$0x73625140] }
  0x76   :  { %900 = vst [vmem:[#allocation1] ss:$4 sm:$0xff] %v1364_v0  ;;  %802 = vrot.lane.b32.xlu2 %v800_v34, %s1329_s26  ;;  %v109_v34 = vperm.slane %v1415_v15, 0 }
  0x78   :  { %v117_v43 = vunpack.c.l.bf16 %v109_v34 }
  0x7a   :  { %v130_v44 = vpop.permute.xlu2 %129 }
  0x7d   :  { %v907_v35 = vld.sshfl [vmem:[#allocation1 + $0x18] sm:$0xff pattern:$0x73625140]  ;;  %v901_v36 = vld.sshfl [vmem:[#allocation1] sm:$0xff pattern:$0x73625140] }
  0x7e   :  { %915 = vrot.lane.b32.xlu0 %v907_v35, %s1330_s27  ;;  %v903_v37 = vld.sshfl [vmem:[#allocation1 + $0x8] sm:$0xff pattern:$0x73625140]  ;;  %v905_v38 = vld.sshfl [vmem:[#allocation1 + $0x10] sm:$0xff pattern:$0x73625140]  ;;  %784 = vrot.lane.b32.xlu2 %v776_v33, %s1329_s26 }
  0x7f   :  { %924 = vst [vmem:[#allocation1] ss:$4 sm:$0xff] %v1364_v0  ;;  %v105_v33 = vperm.slane %v1413_v14, 0 }
  0x81   :  { %v116_v42 = vunpack.c.l.bf16 %v105_v33 }
  0x83   :  { %v1394_v57 = vpop.permute.xlu2 %68 }
  0x86   :  { %v925_v41 = vld.sshfl [vmem:[#allocation1] sm:$0xff pattern:$0x73625140]  ;;  %911 = vrot.lane.b32.xlu0 %v903_v37, %s1330_s27  ;;  %913 = vrot.lane.b32.xlu2 %v905_v38, %s1330_s27  ;;  %v101_v38 = vperm.slane %v1418_v25, 0 }
  0x87   :  { %927 = vrot.lane.b32.xlu1 %v925_v41, %s1330_s27  ;;  %1025 = vst [vmem:[#allocation1] ss:$4 sm:$0xff] %v1364_v0 }
  0x8b   :  { %v1410_v11 = vpop.permute.xlu2 %64 }
  0x8e   :  { %v1030_v47 = vld.sshfl [vmem:[#allocation1 + $0x10] sm:$0xff pattern:$0x73625140]  ;;  %v1026_v48 = vld.sshfl [vmem:[#allocation1] sm:$0xff pattern:$0x73625140] }
  0x8f   :  { %909 = vrot.lane.b32.xlu1 %v901_v36, %s1330_s27  ;;  %v1028_v51 = vld.sshfl [vmem:[#allocation1 + $0x8] sm:$0xff pattern:$0x73625140]  ;;  %v1032_v52 = vld.sshfl [vmem:[#allocation1 + $0x18] sm:$0xff pattern:$0x73625140] }
  0x90   :  { %1049 = vst [vmem:[#allocation1] ss:$4 sm:$0xff] %v1364_v0  ;;  %1040 = vrot.lane.b32.xlu2 %v1032_v52, %s1331_s28 }
  0x97   :  { %1038 = vrot.lane.b32.xlu1 %v1030_v47, %s1331_s28  ;;  %v1050_v62 = vld.sshfl [vmem:[#allocation1] sm:$0xff pattern:$0x73625140] }
  0x98   :  { %1052 = vrot.lane.b32.xlu0 %v1050_v62, %s1331_s28  ;;  %1036 = vrot.lane.b32.xlu2 %v1028_v51, %s1331_s28  ;;  %v115_v51 = vunpack.c.l.bf16 %v101_v38 }
  0x9a   :  { %v145_v0 = vpop.permute.xlu0 %144  ;;  %v143_v1 = vpop.permute.xlu1 %142 }
  0x9b   :  { %v150_v5 = vsel %vm148_vm0, %v143_v1, %v145_v0 }
  0x9c   :  { %v178_v6 = vunpack.c.l.bf16 %v150_v5 }
  0x9e   :  { %v186_v8 = vmul.f32 %v182_v2, %v178_v6  ;;  %v114_v6 = vunpack.c.l.bf16 %v97_v60 }
  0xa0   :  { %v190_v12 = vpack.c.bf16 %v186_v8, %v186_v8  ;;  %1034 = vrot.lane.b32.xlu0 %v1026_v48, %s1331_s28 }
  0xa2   :  { %v147_v16 = vpop.permute.xlu0 %146  ;;  %v141_v17 = vpop.permute.xlu1 %140  ;;  %v204_v18 = vsel %vm196_vm1, %v190_v12, 0 }
  0xa3   :  { %v151_v26 = vsel %vm148_vm0, %v145_v0, %v147_v16  ;;  %v149_v27 = vsel %vm148_vm0, %v141_v17, %v143_v1  ;;  %v158_v28 = vsel %vm148_vm0, %v130_v44, %v141_v17  ;;  %242 = vmatpush.bf16.msra.mxu2 %v204_v18  ;;  %v349_v44 = vpop.permute.xlu2 %348  ;;  %v36_v17 = vld [vmem:[%s1594_s0] sm:$0x3] }
  0xa4   :  { %v179_v30 = vunpack.c.l.bf16 %v151_v26  ;;  %v176_v31 = vunpack.c.l.bf16 %v158_v28  ;;  %v177_v32 = vunpack.c.l.bf16 %v149_v27  ;;  %v364_v27 = vperm.slane %v1413_v14, 1 }
  0xa6   :  { %1225 = vmatmul.msk.bf16.vlgmr.msra.gmra.mxu2 %vm192_vm2, %v37_v29  ;;  %v184_v35 = vmul.f32 %v180_v13, %v176_v31  ;;  %v185_v36 = vmul.f32 %v181_v19, %v177_v32  ;;  %v187_v37 = vmul.f32 %v183_v20, %v179_v30  ;;  %v362_v30 = vperm.slane %v1430_v45, 1 }
  0xa7   :  { %v372_v33 = vunpack.c.l.bf16 %v364_v27 }
  0xa8   :  { %v188_v39 = vpack.c.bf16 %v184_v35, %v184_v35  ;;  %v189_v40 = vpack.c.bf16 %v185_v36, %v185_v36  ;;  %v191_v41 = vpack.c.bf16 %v187_v37, %v187_v37  ;;  %v370_v38 = vunpack.c.l.bf16 %v362_v30 }
  0xaa   :  { %v71_v46 = vpop.permute.xlu0 %70  ;;  %v67_v47 = vpop.permute.xlu1 %66  ;;  %v198_v48 = vsel %vm196_vm1, %v188_v39, 0  ;;  %v201_v49 = vsel %vm196_vm1, %v189_v40, 0  ;;  %v207_v50 = vsel %vm196_vm1, %v191_v41, 0 }
  0xab   :  { %v75_v52 = vsel %vm72_vm3, %v1394_v57, %v71_v46  ;;  %v74_v55 = vsel %vm72_vm3, %v67_v47, %v1394_v57  ;;  %216 = vmatpush.bf16.msra.mxu0 %v198_v48  ;;  %229 = vmatpush.bf16.msra.mxu1 %v201_v49  ;;  %v73_v53 = vsel %vm72_vm3, %v1410_v11, %v67_v47  ;;  %v365_v57 = vperm.slane %v1415_v15, 1  ;;  %v332_v26 = vpop.permute.xlu2 %331 }
  0xac   :  { %v113_v56 = vunpack.c.l.bf16 %v75_v52  ;;  %v112_v58 = vunpack.c.l.bf16 %v74_v55  ;;  %255 = vmatpush.bf16.msra.mxu3 %v207_v50  ;;  %v111_v59 = vunpack.c.l.bf16 %v73_v53  ;;  %v490_v47 = vperm.slane %v1404_v4, 1 }
  0xad   :  { %v373_v13 = vunpack.c.l.bf16 %v365_v57 }
  0xae   :  { %1223 = vmatmul.msk.bf16.vlgmr.msra.gmra.mxu0 %vm192_vm2, %v37_v29  ;;  %1224 = vmatmul.msk.bf16.vlgmr.msra.gmra.mxu1 %vm192_vm2, %v37_v29  ;;  %v120_v61 = vmul.f32 %v116_v42, %v112_v58  ;;  %v121_v62 = vmul.f32 %v117_v43, %v113_v56  ;;  %v119_v0 = vmul.f32 %v115_v51, %v111_v59  ;;  %v489_v51 = vperm.slane %v1392_v54, 1 }
  0xaf   :  { %1226 = vmatmul.msk.bf16.vlgmr.msra.gmra.mxu3 %vm192_vm2, %v37_v29  ;;  %v498_v58 = vunpack.c.l.bf16 %v490_v47  ;;  %v39_v47 = vld [vmem:[%s1594_s0 + $0x6] sm:$0x3] }
  0xb0   :  { %v124_v1 = vpack.c.bf16 %v120_v61, %v120_v61  ;;  %v125_v2 = vpack.c.bf16 %v121_v62, %v121_v62  ;;  %v123_v5 = vpack.c.bf16 %v119_v0, %v119_v0  ;;  %v497_v0 = vunpack.c.l.bf16 %v489_v51 }
  0xb2   :  { %v54_v7 = vpop.permute.xlu0 %53  ;;  %v271_v8 = vsel %vm196_vm1, %v124_v1, 0  ;;  %v274_v9 = vsel %vm196_vm1, %v125_v2, 0  ;;  %v347_v10 = vpop.permute.xlu1 %346  ;;  %v268_v12 = vsel %vm196_vm1, %v123_v5, 0  ;;  %v38_v1 = vld [vmem:[%s1594_s0 + $0x4] sm:$0x3] }
  0xb3   :  { %v82_v16 = vsel %vm72_vm3, %v54_v7, %v1410_v11  ;;  %309 = vmatpush.bf16.msrb.mxu2 %v271_v8  ;;  %322 = vmatpush.bf16.msrb.mxu3 %v274_v9  ;;  %v353_v18 = vsel %vm350_vm4, %v347_v10, %v349_v44  ;;  %v363_v11 = vperm.slane %v1418_v25, 1  ;;  %v470_v52 = vpop.permute.xlu2 %469 }
  0xb4   :  { %v110_v19 = vunpack.c.l.bf16 %v82_v16  ;;  %296 = vmatpush.bf16.msrb.mxu1 %v268_v12  ;;  %v369_v20 = vunpack.c.l.bf16 %v353_v18  ;;  %v487_v12 = vperm.slane %v1400_v63, 1  ;;  %v590_v18 = vsel %vm196_vm1, %v1379_v23, 0 }
  0xb5   :  { %v371_v36 = vunpack.c.l.bf16 %v363_v11  ;;  %v592_v23 = vsel %vm196_vm1, %v1381_v24, 0  ;;  %v588_v24 = vsel %vm196_vm1, %v1377_v22, 0  ;;  %v687_v22 = vperm.slane %v1404_v4, 2 }
  0xb6   :  { %1229 = vmatmul.msk.bf16.vlgmr.msrb.gmra.mxu2 %vm192_vm2, %v36_v17  ;;  %v377_v28 = vmul.f32 %v373_v13, %v369_v20  ;;  %v118_v29 = vmul.f32 %v114_v6, %v110_v19 }
  0xb8   :  { %v381_v31 = vpack.c.bf16 %v377_v28, %v377_v28  ;;  %v122_v32 = vpack.c.bf16 %v118_v29, %v118_v29 }
  0xba   :  { %v345_v34 = vpop.permute.xlu0 %344  ;;  %v265_v35 = vsel %vm196_vm1, %v122_v32, 0  ;;  %v343_v37 = vpop.permute.xlu1 %342  ;;  %v395_v39 = vsel %vm196_vm1, %v381_v31, 0 }
  0xbb   :  { %v352_v40 = vsel %vm350_vm4, %v345_v34, %v347_v10  ;;  %283 = vmatpush.bf16.msrb.mxu0 %v265_v35  ;;  %v351_v41 = vsel %vm350_vm4, %v343_v37, %v345_v34  ;;  %v360_v42 = vsel %vm350_vm4, %v332_v26, %v343_v37  ;;  %443 = vmatpush.bf16.msra.mxu3 %v395_v39  ;;  %v488_v10 = vperm.slane %v1402_v3, 1  ;;  %v666_v13 = vpop.permute.xlu2 %665 }
  0xbc   :  { %v368_v43 = vunpack.c.l.bf16 %v352_v40  ;;  %v367_v44 = vunpack.c.l.bf16 %v351_v41  ;;  %v366_v46 = vunpack.c.l.bf16 %v360_v42  ;;  %v495_v26 = vunpack.c.l.bf16 %v487_v12 }
  0xbd   :  { %v496_v19 = vunpack.c.l.bf16 %v488_v10  ;;  %v686_v35 = vperm.slane %v1392_v54, 2  ;;  %v586_v40 = vsel %vm196_vm1, %v1375_v21, 0 }
  0xbe   :  { %v376_v48 = vmul.f32 %v372_v33, %v368_v43  ;;  %v375_v49 = vmul.f32 %v371_v36, %v367_v44  ;;  %1227 = vmatmul.msk.bf16.vlgmr.msrb.gmra.mxu0 %vm192_vm2, %v36_v17  ;;  %1228 = vmatmul.msk.bf16.vlgmr.msrb.gmra.mxu1 %vm192_vm2, %v36_v17  ;;  %v374_v50 = vmul.f32 %v370_v38, %v366_v46  ;;  %v685_v36 = vperm.slane %v1402_v3, 2 }
  0xbf   :  { %1230 = vmatmul.msk.bf16.vlgmr.msrb.gmra.mxu3 %vm192_vm2, %v36_v17  ;;  %v694_v43 = vunpack.c.l.bf16 %v686_v35 }
  0xc0   :  { %v380_v55 = vpack.c.bf16 %v376_v48, %v376_v48  ;;  %v379_v53 = vpack.c.bf16 %v375_v49, %v375_v49  ;;  %v378_v56 = vpack.c.bf16 %v374_v50, %v374_v50  ;;  %v693_v46 = vunpack.c.l.bf16 %v685_v36 }
  0xc2   :  { %v392_v59 = vsel %vm196_vm1, %v380_v55, 0  ;;  %v472_v60 = vpop.permute.xlu0 %471  ;;  %v389_v61 = vsel %vm196_vm1, %v379_v53, 0  ;;  %v474_v62 = vpop.permute.xlu1 %473  ;;  %v386_v57 = vsel %vm196_vm1, %v378_v56, 0  ;;  %v695_v55 = vunpack.c.l.bf16 %v687_v22 }
  0xc3   :  { %430 = vmatpush.bf16.msra.mxu2 %v392_v59  ;;  %417 = vmatpush.bf16.msra.mxu1 %v389_v61  ;;  %v478_v2 = vsel %vm475_vm5, %v472_v60, %v474_v62  ;;  %v477_v5 = vsel %vm475_vm5, %v470_v52, %v472_v60  ;;  %v662_v39 = vpop.permute.xlu2 %661 }
  0xc4   :  { %v494_v6 = vunpack.c.l.bf16 %v478_v2  ;;  %v493_v7 = vunpack.c.l.bf16 %v477_v5  ;;  %404 = vmatpush.bf16.msra.mxu0 %v386_v57  ;;  %v684_v57 = vperm.slane %v1400_v63, 2  ;;  %v812_v5 = vperm.slane %v1415_v15, 3 }
  0xc6   :  { %1233 = vmatmul.msk.bf16.vlgmr.msra.gmra.mxu2 %vm192_vm2, %v38_v1  ;;  %v502_v8 = vmul.f32 %v498_v58, %v494_v6  ;;  %v501_v9 = vmul.f32 %v497_v0, %v493_v7  ;;  %v692_v6 = vunpack.c.l.bf16 %v684_v57  ;;  %v820_v15 = vunpack.c.l.bf16 %v812_v5 }
  0xc8   :  { %v506_v16 = vpack.c.bf16 %v502_v8, %v502_v8  ;;  %v505_v17 = vpack.c.bf16 %v501_v9, %v501_v9 }
  0xca   :  { %v468_v20 = vpop.permute.xlu0 %467  ;;  %v457_v27 = vpop.permute.xlu1 %456  ;;  %v517_v28 = vsel %vm196_vm1, %v505_v17, 0  ;;  %v520_v29 = vsel %vm196_vm1, %v506_v16, 0  ;;  %v40_v17 = vld [vmem:[%s1594_s0 + $0x8] sm:$0x3] }
  0xcb   :  { %v476_v11 = vsel %vm475_vm5, %v468_v20, %v470_v52  ;;  %v485_v30 = vsel %vm475_vm5, %v457_v27, %v468_v20  ;;  %555 = vmatpush.bf16.msrb.mxu2 %v517_v28  ;;  %568 = vmatpush.bf16.msrb.mxu3 %v520_v29  ;;  %v810_v20 = vperm.slane %v1418_v25, 3 }
  0xcc   :  { %v492_v31 = vunpack.c.l.bf16 %v476_v11  ;;  %v491_v32 = vunpack.c.l.bf16 %v485_v30 }
  0xce   :  { %v500_v33 = vmul.f32 %v496_v19, %v492_v31  ;;  %1231 = vmatmul.msk.bf16.vlgmr.msra.gmra.mxu0 %vm192_vm2, %v38_v1  ;;  %1232 = vmatmul.msk.bf16.vlgmr.msra.gmra.mxu1 %vm192_vm2, %v38_v1  ;;  %v499_v34 = vmul.f32 %v495_v26, %v491_v32  ;;  %v811_v19 = vperm.slane %v1413_v14, 3  ;;  %v809_v26 = vperm.slane %v1430_v45, 3 }
  0xcf   :  { %627 = vmatpush.bf16.msra.mxu2 %v590_v18  ;;  %1234 = vmatmul.msk.bf16.vlgmr.msra.gmra.mxu3 %vm192_vm2, %v38_v1  ;;  %v818_v32 = vunpack.c.l.bf16 %v810_v20 }
  0xd0   :  { %v504_v37 = vpack.c.bf16 %v500_v33, %v500_v33  ;;  %v503_v38 = vpack.c.bf16 %v499_v34, %v499_v34  ;;  %640 = vmatpush.bf16.msra.mxu3 %v592_v23  ;;  %v803_v62 = vpop.permute.xlu2 %802  ;;  %v819_v11 = vunpack.c.l.bf16 %v811_v19  ;;  %v817_v33 = vunpack.c.l.bf16 %v809_v26 }
  0xd2   :  { %v514_v41 = vsel %vm196_vm1, %v504_v37, 0  ;;  %v511_v42 = vsel %vm196_vm1, %v503_v38, 0  ;;  %v664_v44 = vpop.permute.xlu1 %663 }
  0xd3   :  { %542 = vmatpush.bf16.msrb.mxu1 %v514_v41  ;;  %529 = vmatpush.bf16.msrb.mxu0 %v511_v42  ;;  %v670_v48 = vsel %vm667_vm6, %v664_v44, %v666_v13  ;;  %v669_v49 = vsel %vm667_vm6, %v662_v39, %v664_v44 }
  0xd4   :  { %v690_v21 = vunpack.c.l.bf16 %v670_v48  ;;  %v689_v50 = vunpack.c.l.bf16 %v669_v49 }
  0xd6   :  { %1237 = vmatmul.msk.bf16.vlgmr.msrb.gmra.mxu2 %vm192_vm2, %v39_v47  ;;  %v698_v51 = vmul.f32 %v694_v43, %v690_v21  ;;  %v697_v52 = vmul.f32 %v693_v46, %v689_v50 }
  0xd7   :  { %614 = vmatpush.bf16.msra.mxu1 %v588_v24  ;;  %601 = vmatpush.bf16.msra.mxu0 %v586_v40  ;;  %v678_v53 = vpop.permute.xlu0 %677  ;;  %v936_v40 = vperm.slane %v1392_v54, 3 }
  0xd8   :  { %v702_v56 = vpack.c.bf16 %v698_v51, %v698_v51  ;;  %v682_v58 = vsel %vm667_vm6, %v666_v13, %v678_v53  ;;  %v701_v59 = vpack.c.bf16 %v697_v52, %v697_v52  ;;  %v785_v27 = vpop.permute.xlu2 %784  ;;  %v41_v51 = vld [vmem:[%s1594_s0 + $0xa] sm:$0x3]  ;;  %v937_v53 = vperm.slane %v1404_v4, 3 }
  0xd9   :  { %v691_v60 = vunpack.c.l.bf16 %v682_v58  ;;  %v944_v49 = vunpack.c.l.bf16 %v936_v40  ;;  %v48_v58 = vld [vmem:[#allocation2 + $0x18] sm:$0x11] }
  0xda   :  { %v714_v61 = vsel %vm196_vm1, %v702_v56, 0  ;;  %v711_v1 = vsel %vm196_vm1, %v701_v59, 0  ;;  %v47_v59 = vld [vmem:[#allocation2 + $0x10] sm:$0x11]  ;;  %v1064_v4 = vunpack.c.h.b16 %v48_v58 }
  0xdb   :  { %v699_v0 = vmul.f32 %v695_v55, %v691_v60  ;;  %752 = vmatpush.bf16.msrb.mxu2 %v714_v61  ;;  %v935_v55 = vperm.slane %v1402_v3, 3  ;;  %v1062_v5 = vunpack.c.h.b16 %v47_v59 }
  0xdd   :  { %v703_v2 = vpack.c.bf16 %v699_v0, %v699_v0  ;;  %v943_v60 = vunpack.c.l.bf16 %v935_v55  ;;  %v945_v0 = vunpack.c.l.bf16 %v937_v53 }
  0xde   :  { %1235 = vmatmul.msk.bf16.vlgmr.msrb.gmra.mxu0 %vm192_vm2, %v39_v47  ;;  %1236 = vmatmul.msk.bf16.vlgmr.msrb.gmra.mxu1 %vm192_vm2, %v39_v47 }
  0xdf   :  { %1238 = vmatmul.msk.bf16.vlgmr.msrb.gmra.mxu3 %vm192_vm2, %v39_v47  ;;  %v660_v7 = vpop.permute.xlu0 %659  ;;  %v717_v8 = vsel %vm196_vm1, %v703_v2, 0  ;;  %v791_v9 = vpop.permute.xlu1 %790  ;;  %739 = vmatpush.bf16.msrb.mxu1 %v711_v1  ;;  %v1063_v2 = vunpack.c.l.b16 %v48_v58 }
  0xe0   :  { %v668_v10 = vsel %vm667_vm6, %v660_v7, %v662_v39  ;;  %765 = vmatpush.bf16.msrb.mxu3 %v717_v8  ;;  %v807_v12 = vsel %vm792_vm7, %v791_v9, %v803_v62  ;;  %v914_v46 = vpop.permute.xlu2 %913 }
  0xe1   :  { %v688_v13 = vunpack.c.l.bf16 %v668_v10  ;;  %v816_v16 = vunpack.c.l.bf16 %v807_v12  ;;  %v934_v10 = vperm.slane %v1400_v63, 3 }
  0xe3   :  { %v696_v18 = vmul.f32 %v692_v6, %v688_v13  ;;  %v824_v29 = vmul.f32 %v820_v15, %v816_v16  ;;  %v1067_v13 = vpack.c.b16 %v1063_v2, %v1063_v2  ;;  %v1066_v15 = vpack.c.b16 %v1062_v5, %v1062_v5  ;;  %v44_v2 = vld [vmem:[%s1594_s0 + $0x10] sm:$0x3] }
  0xe4   :  { %v942_v20 = vunpack.c.l.bf16 %v934_v10 }
  0xe5   :  { %v700_v28 = vpack.c.bf16 %v696_v18, %v696_v18  ;;  %v828_v35 = vpack.c.bf16 %v824_v29, %v824_v29  ;;  %v1078_v63 = vpack.i.b16 %v1067_v13, %v1067_v13 }
  0xe6   :  { %1241 = vmatmul.msk.bf16.vlgmr.msra.gmra.mxu2 %vm192_vm2, %v40_v17 }
  0xe7   :  { %v789_v30 = vpop.permute.xlu0 %788  ;;  %v708_v31 = vsel %vm196_vm1, %v700_v28, 0  ;;  %v787_v23 = vpop.permute.xlu1 %786  ;;  %v842_v44 = vsel %vm196_vm1, %v828_v35, 0  ;;  %v1074_v28 = vpack.i.b16 %v1066_v15, %v1066_v15 }
  0xe8   :  { %v795_v34 = vsel %vm792_vm7, %v789_v30, %v791_v9  ;;  %726 = vmatpush.bf16.msrb.mxu0 %v708_v31  ;;  %v794_v14 = vsel %vm792_vm7, %v787_v23, %v789_v30  ;;  %v793_v25 = vsel %vm792_vm7, %v785_v27, %v787_v23  ;;  %v1061_v30 = vunpack.c.l.b16 %v47_v59  ;;  %v42_v31 = vld [vmem:[%s1594_s0 + $0xc] sm:$0x3] }
  0xe9   :  { %v815_v45 = vunpack.c.l.bf16 %v795_v34  ;;  %v814_v36 = vunpack.c.l.bf16 %v794_v14  ;;  %v813_v37 = vunpack.c.l.bf16 %v793_v25  ;;  %v1076_v34 = vperm.slane %v1074_v28, 0 }
  0xea   :  { %v1041_v12 = vpop.permute.xlu2 %1040  ;;  %v1065_v25 = vpack.c.b16 %v1061_v30, %v1061_v30 }
  0xeb   :  { %v823_v38 = vmul.f32 %v819_v11, %v815_v45  ;;  %v822_v39 = vmul.f32 %v818_v32, %v814_v36  ;;  %v821_v24 = vmul.f32 %v817_v33, %v813_v37  ;;  %v1080_v33 = vperm.slane %v1078_v63, 0 }
  0xed   :  { %v827_v41 = vpack.c.bf16 %v823_v38, %v823_v38  ;;  %v826_v42 = vpack.c.bf16 %v822_v39, %v822_v39  ;;  %v825_v43 = vpack.c.bf16 %v821_v24, %v821_v24  ;;  %v1091_v36 = vunpack.c.l.bf16 %v1080_v33 }
  0xee   :  { %1239 = vmatmul.msk.bf16.vlgmr.msra.gmra.mxu0 %vm192_vm2, %v40_v17  ;;  %1240 = vmatmul.msk.bf16.vlgmr.msra.gmra.mxu1 %vm192_vm2, %v40_v17  ;;  %v1090_v39 = vunpack.c.l.bf16 %v1076_v34 }
  0xef   :  { %1242 = vmatmul.msk.bf16.vlgmr.msra.gmra.mxu3 %vm192_vm2, %v40_v17  ;;  %v839_v47 = vsel %vm196_vm1, %v827_v41, 0  ;;  %v836_v48 = vsel %vm196_vm1, %v826_v42, 0  ;;  %v833_v22 = vsel %vm196_vm1, %v825_v43, 0  ;;  %v1068_v17 = vpack.c.b16 %v1064_v4, %v1064_v4 }
  0xf0   :  { %877 = vmatpush.bf16.msra.mxu2 %v839_v47  ;;  %890 = vmatpush.bf16.msra.mxu3 %v842_v44  ;;  %v916_v54 = vpop.permute.xlu0 %915  ;;  %v1070_v43 = vpack.i.b16 %v1065_v25, %v1065_v25 }
  0xf1   :  { %864 = vmatpush.bf16.msra.mxu1 %v836_v48  ;;  %v920_v21 = vsel %vm917_vm8, %v914_v46, %v916_v54  ;;  %851 = vmatpush.bf16.msra.mxu0 %v833_v22  ;;  %v1082_v11 = vpack.i.b16 %v1068_v17, %v1068_v17 }
  0xf2   :  { %v940_v50 = vunpack.c.l.bf16 %v920_v21  ;;  %v1037_v35 = vpop.permute.xlu2 %1036  ;;  %v1072_v21 = vperm.slane %v1070_v43, 0 }
  0xf3   :  { %v1084_v14 = vperm.slane %v1082_v11, 0 }
  0xf4   :  { %v948_v52 = vmul.f32 %v944_v49, %v940_v50 }
  0xf5   :  { %v1092_v40 = vunpack.c.l.bf16 %v1084_v14 }
  0xf6   :  { %1245 = vmatmul.msk.bf16.vlgmr.msrb.gmra.mxu2 %vm192_vm2, %v41_v51  ;;  %v952_v56 = vpack.c.bf16 %v948_v52, %v948_v52 }
  0xf8   :  { %v912_v61 = vpop.permute.xlu0 %911  ;;  %v964_v62 = vsel %vm196_vm1, %v952_v56, 0  ;;  %v1089_v56 = vunpack.c.l.bf16 %v1072_v21 }
  0xf9   :  { %v928_v57 = vpop.permute.xlu1 %927  ;;  %v919_v1 = vsel %vm917_vm8, %v912_v61, %v914_v46  ;;  %1002 = vmatpush.bf16.msrb.mxu2 %v964_v62 }
  0xfa   :  { %v932_v3 = vsel %vm917_vm8, %v916_v54, %v928_v57  ;;  %v939_v6 = vunpack.c.l.bf16 %v919_v1 }
  0xfb   :  { %v941_v7 = vunpack.c.l.bf16 %v932_v3 }
  0xfc   :  { %v947_v8 = vmul.f32 %v943_v60, %v939_v6  ;;  %v43_v60 = vld [vmem:[%s1594_s0 + $0xe] sm:$0x3] }
  0xfd   :  { %v949_v9 = vmul.f32 %v945_v0, %v941_v7 }
  0xfe   :  { %1243 = vmatmul.msk.bf16.vlgmr.msrb.gmra.mxu0 %vm192_vm2, %v41_v51  ;;  %1244 = vmatmul.msk.bf16.vlgmr.msrb.gmra.mxu1 %vm192_vm2, %v41_v51  ;;  %v951_v16 = vpack.c.bf16 %v947_v8, %v947_v8 }
  0xff   :  { %1246 = vmatmul.msk.bf16.vlgmr.msrb.gmra.mxu3 %vm192_vm2, %v41_v51  ;;  %v953_v18 = vpack.c.bf16 %v949_v9, %v949_v9 }
 0x100   :  { %v961_v19 = vsel %vm196_vm1, %v951_v16, 0 }
 0x101   :  { %v910_v26 = vpop.permute.xlu1 %909  ;;  %v967_v27 = vsel %vm196_vm1, %v953_v18, 0  ;;  %989 = vmatpush.bf16.msrb.mxu1 %v961_v19 }
 0x102   :  { %v918_v29 = vsel %vm917_vm8, %v910_v26, %v912_v61  ;;  %1015 = vmatpush.bf16.msrb.mxu3 %v967_v27 }
 0x103   :  { %v938_v32 = vunpack.c.l.bf16 %v918_v29 }
 0x105   :  { %v946_v23 = vmul.f32 %v942_v20, %v938_v32 }
 0x106   :  { %1249 = vmatmul.msk.bf16.vlgmr.msra.gmra.mxu2 %vm192_vm2, %v42_v31 }
 0x107   :  { %v950_v45 = vpack.c.bf16 %v946_v23, %v946_v23 }
 0x109   :  { %v1039_v37 = vpop.permute.xlu1 %1038  ;;  %v958_v38 = vsel %vm196_vm1, %v950_v45, 0 }
 0x10a   :  { %v1045_v24 = vsel %vm1042_vm9, %v1039_v37, %v1041_v12  ;;  %v1053_v41 = vpop.permute.xlu0 %1052  ;;  %976 = vmatpush.bf16.msrb.mxu0 %v958_v38  ;;  %v1044_v42 = vsel %vm1042_vm9, %v1037_v35, %v1039_v37 }
 0x10b   :  { %v1087_v44 = vunpack.c.l.bf16 %v1045_v24  ;;  %v1057_v46 = vsel %vm1042_vm9, %v1041_v12, %v1053_v41  ;;  %v1086_v47 = vunpack.c.l.bf16 %v1044_v42 }
 0x10c   :  { %v1088_v48 = vunpack.c.l.bf16 %v1057_v46 }
 0x10d   :  { %v1095_v22 = vmul.f32 %v1091_v36, %v1087_v44  ;;  %v1094_v54 = vmul.f32 %v1090_v39, %v1086_v47 }
 0x10e   :  { %1247 = vmatmul.msk.bf16.vlgmr.msra.gmra.mxu0 %vm192_vm2, %v42_v31  ;;  %1248 = vmatmul.msk.bf16.vlgmr.msra.gmra.mxu1 %vm192_vm2, %v42_v31  ;;  %v1096_v49 = vmul.f32 %v1092_v40, %v1088_v48 }
 0x10f   :  { %1250 = vmatmul.msk.bf16.vlgmr.msra.gmra.mxu3 %vm192_vm2, %v42_v31  ;;  %v1099_v50 = vpack.c.bf16 %v1095_v22, %v1095_v22  ;;  %v1098_v51 = vpack.c.bf16 %v1094_v54, %v1094_v54 }
 0x110   :  { %v1100_v52 = vpack.c.bf16 %v1096_v49, %v1096_v49 }
 0x111   :  { %v1111_v55 = vsel %vm196_vm1, %v1099_v50, 0  ;;  %v1108_v53 = vsel %vm196_vm1, %v1098_v51, 0 }
 0x112   :  { %v1035_v58 = vpop.permute.xlu0 %1034  ;;  %1149 = vmatpush.bf16.msra.mxu2 %v1111_v55  ;;  %v1114_v59 = vsel %vm196_vm1, %v1100_v52, 0  ;;  %1136 = vmatpush.bf16.msra.mxu1 %v1108_v53 }
 0x113   :  { %v1043_v61 = vsel %vm1042_vm9, %v1035_v58, %v1037_v35  ;;  %1162 = vmatpush.bf16.msra.mxu3 %v1114_v59 }
 0x114   :  { %v1085_v62 = vunpack.c.l.bf16 %v1043_v61  ;;  %v1173_v61 = vld [vmem:[%s1597_s3 + $0x8] sm:$0xff] }
 0x116   :  { %1253 = vmatmul.msk.bf16.vlgmr.msrb.gmra.mxu2 %vm192_vm2, %v43_v60  ;;  %v1093_v0 = vmul.f32 %v1089_v56, %v1085_v62 }
 0x118   :  { %v1097_v57 = vpack.c.bf16 %v1093_v0, %v1093_v0 }
 0x11a   :  { %v1105_v1 = vsel %vm196_vm1, %v1097_v57, 0  ;;  %v1175_v57 = vmul.f32 0.1, %v1173_v61 }
 0x11b   :  { %1123 = vmatpush.bf16.msra.mxu0 %v1105_v1  ;;  %v1172_v1 = vld [vmem:[%s1597_s3] sm:$0xff]  ;;  %s1332_s3 = smov [#allocation5]  }
 0x11c   :  { %1180 = vst [vmem:[#allocation1 + $0x10] ss:$2 sm:$0xff] %v1175_v57  ;;  %s1211_s1 = sshll.u32 %s1332_s3, 4  ;;  %s1212_s1 = int_to_ptr.vmem [resolvable:$true] %s1211_s1 }
 0x11e   :  { %1251 = vmatmul.msk.bf16.vlgmr.msrb.gmra.mxu0 %vm192_vm2, %v43_v60  ;;  %1252 = vmatmul.msk.bf16.vlgmr.msrb.gmra.mxu1 %vm192_vm2, %v43_v60 }
 0x11f   :  { %1254 = vmatmul.msk.bf16.vlgmr.msrb.gmra.mxu3 %vm192_vm2, %v43_v60 }
 0x126   :  { %1257 = vmatmul.msk.bf16.vlgmr.msra.gmra.mxu2 %vm192_vm2, %v44_v2 }
 0x129   :  { %v244_v5 = vpop.f32.mrf.mxu2 }
 0x12b   :  { %v218_v3 = vpop.f32.mrf.mxu0  ;;  %v231_v6 = vpop.f32.mrf.mxu1 }
 0x12e   :  { %1255 = vmatmul.msk.bf16.vlgmr.msra.gmra.mxu0 %vm192_vm2, %v44_v2  ;;  %1256 = vmatmul.msk.bf16.vlgmr.msra.gmra.mxu1 %vm192_vm2, %v44_v2 }
 0x12f   :  { %1258 = vmatmul.msk.bf16.vlgmr.msra.gmra.mxu3 %vm192_vm2, %v44_v2  ;;  %v1174_v2 = vmul.f32 0.1, %v1172_v1 }
 0x131   :  { %v246_v4 = vpop.f32.mrf.mxu2  ;;  %1178 = vst [vmem:[#allocation1] ss:$2 sm:$0xff] %v1174_v2 }
 0x132   :  { %v257_v7 = vpop.f32.mrf.mxu3 }
 0x133   :  { %v220_v8 = vpop.f32.mrf.mxu0  ;;  %v233_v9 = vpop.f32.mrf.mxu1 }
 0x139   :  { %v311_v10 = vpop.f32.mrf.mxu2 }
 0x13a   :  { %v259_v12 = vpop.f32.mrf.mxu3  ;;  %v312_v13 = vadd.f32 %v311_v10, %v244_v5 }
 0x13b   :  { %v285_v15 = vpop.f32.mrf.mxu0  ;;  %v298_v16 = vpop.f32.mrf.mxu1 }
 0x13c   :  { %v286_v17 = vadd.f32 %v285_v15, %v218_v3  ;;  %v299_v18 = vadd.f32 %v298_v16, %v231_v6 }
 0x141   :  { %v313_v19 = vpop.f32.mrf.mxu2 }
 0x142   :  { %v324_v20 = vpop.f32.mrf.mxu3 }
 0x143   :  { %v325_v26 = vadd.f32 %v324_v20, %v257_v7  ;;  %v287_v27 = vpop.f32.mrf.mxu0  ;;  %v300_v63 = vpop.f32.mrf.mxu1 }
 0x149   :  { %v432_v28 = vpop.f32.mrf.mxu2 }
 0x14a   :  { %v326_v29 = vpop.f32.mrf.mxu3  ;;  %v451_v11 = vadd.f32 %v432_v28, %v312_v13 }
 0x14b   :  { %v406_v30 = vpop.f32.mrf.mxu0  ;;  %v419_v31 = vpop.f32.mrf.mxu1 }
 0x14c   :  { %v449_v32 = vadd.f32 %v406_v30, %v286_v17  ;;  %v450_v23 = vadd.f32 %v419_v31, %v299_v18 }
 0x151   :  { %v434_v33 = vpop.f32.mrf.mxu2 }
 0x152   :  { %v445_v34 = vpop.f32.mrf.mxu3 }
 0x153   :  { %v452_v14 = vadd.f32 %v445_v34, %v325_v26  ;;  %v408_v25 = vpop.f32.mrf.mxu0  ;;  %v421_v45 = vpop.f32.mrf.mxu1 }
 0x154   :  { %v1182_v25 = vld.sshfl [vmem:[#allocation1 + $0x8] sm:$0xff pattern:$0x75316420] }
 0x159   :  { %v557_v35 = vpop.f32.mrf.mxu2 }
 0x15a   :  { %v447_v36 = vpop.f32.mrf.mxu3  ;;  %v576_v37 = vadd.f32 %v557_v35, %v451_v11 }
 0x15b   :  { %v531_v38 = vpop.f32.mrf.mxu0  ;;  %v544_v39 = vpop.f32.mrf.mxu1 }
 0x15c   :  { %v574_v24 = vadd.f32 %v531_v38, %v449_v32  ;;  %v575_v40 = vadd.f32 %v544_v39, %v450_v23  ;;  %v1181_v38 = vld.sshfl [vmem:[#allocation1] sm:$0xff pattern:$0x75316420] }
 0x161   :  { %v559_v41 = vpop.f32.mrf.mxu2 }
 0x162   :  { %v570_v42 = vpop.f32.mrf.mxu3 }
 0x163   :  { %v577_v43 = vadd.f32 %v570_v42, %v452_v14  ;;  %v533_v44 = vpop.f32.mrf.mxu0  ;;  %v546_v46 = vpop.f32.mrf.mxu1 }
 0x169   :  { %v629_v47 = vpop.f32.mrf.mxu2 }
 0x16a   :  { %v572_v48 = vpop.f32.mrf.mxu3  ;;  %v648_v22 = vadd.f32 %v629_v47, %v576_v37 }
 0x16b   :  { %v603_v54 = vpop.f32.mrf.mxu0  ;;  %v616_v49 = vpop.f32.mrf.mxu1 }
 0x16c   :  { %v646_v26 = vadd.f32 %v603_v54, %v574_v24  ;;  %v647_v27 = vadd.f32 %v616_v49, %v575_v40  ;;  %v1184_v54 = vld.sshfl [vmem:[#allocation1 + $0x18] sm:$0xff pattern:$0x75316420] }
 0x171   :  { %v631_v21 = vpop.f32.mrf.mxu2 }
 0x172   :  { %v642_v50 = vpop.f32.mrf.mxu3 }
 0x173   :  { %v605_v51 = vpop.f32.mrf.mxu0  ;;  %v618_v52 = vpop.f32.mrf.mxu1  ;;  %v649_v33 = vadd.f32 %v642_v50, %v577_v43 }
 0x179   :  { %v754_v55 = vpop.f32.mrf.mxu2 }
 0x17a   :  { %v644_v53 = vpop.f32.mrf.mxu3  ;;  %v773_v36 = vadd.f32 %v754_v55, %v648_v22  ;;  %v1183_v22 = vld.sshfl [vmem:[#allocation1 + $0x10] sm:$0xff pattern:$0x75316420] }
 0x17b   :  { %v728_v56 = vpop.f32.mrf.mxu0  ;;  %v741_v58 = vpop.f32.mrf.mxu1 }
 0x17c   :  { %v771_v63 = vadd.f32 %v728_v56, %v646_v26  ;;  %v772_v28 = vadd.f32 %v741_v58, %v647_v27 }
 0x181   :  { %v756_v59 = vpop.f32.mrf.mxu2 }
 0x182   :  { %v767_v60 = vpop.f32.mrf.mxu3 }
 0x183   :  { %v730_v62 = vpop.f32.mrf.mxu0  ;;  %v743_v0 = vpop.f32.mrf.mxu1  ;;  %v774_v37 = vadd.f32 %v767_v60, %v649_v33 }
 0x189   :  { %v879_v5 = vpop.f32.mrf.mxu2 }
 0x18a   :  { %v769_v3 = vpop.f32.mrf.mxu3  ;;  %v898_v24 = vadd.f32 %v879_v5, %v773_v36 }
 0x18b   :  { %v853_v6 = vpop.f32.mrf.mxu0  ;;  %v866_v4 = vpop.f32.mrf.mxu1 }
 0x18c   :  { %v896_v29 = vadd.f32 %v853_v6, %v771_v63  ;;  %v897_v11 = vadd.f32 %v866_v4, %v772_v28 }
 0x191   :  { %v881_v7 = vpop.f32.mrf.mxu2 }
 0x192   :  { %v892_v8 = vpop.f32.mrf.mxu3 }
 0x193   :  { %v855_v9 = vpop.f32.mrf.mxu0  ;;  %v868_v10 = vpop.f32.mrf.mxu1  ;;  %v899_v40 = vadd.f32 %v892_v8, %v774_v37 }
 0x199   :  { %v1004_v12 = vpop.f32.mrf.mxu2 }
 0x19a   :  { %v894_v13 = vpop.f32.mrf.mxu3  ;;  %v1023_v44 = vadd.f32 %v1004_v12, %v898_v24 }
 0x19b   :  { %v978_v15 = vpop.f32.mrf.mxu0  ;;  %v991_v16 = vpop.f32.mrf.mxu1 }
 0x19c   :  { %v1021_v31 = vadd.f32 %v978_v15, %v896_v29  ;;  %v1022_v32 = vadd.f32 %v991_v16, %v897_v11 }
 0x1a1   :  { %v1006_v17 = vpop.f32.mrf.mxu2 }
 0x1a2   :  { %v1017_v18 = vpop.f32.mrf.mxu3 }
 0x1a3   :  { %v980_v19 = vpop.f32.mrf.mxu0  ;;  %v993_v20 = vpop.f32.mrf.mxu1  ;;  %v1024_v46 = vadd.f32 %v1017_v18, %v899_v40 }
 0x1a9   :  { %v1151_v30 = vpop.f32.mrf.mxu2 }
 0x1aa   :  { %v1019_v23 = vpop.f32.mrf.mxu3  ;;  %v1170_v49 = vadd.f32 %v1151_v30, %v1023_v44 }
 0x1ab   :  { %v1125_v34 = vpop.f32.mrf.mxu0  ;;  %v1138_v14 = vpop.f32.mrf.mxu1 }
 0x1ac   :  { %v1168_v45 = vadd.f32 %v1125_v34, %v1021_v31  ;;  %v1169_v35 = vadd.f32 %v1138_v14, %v1022_v32  ;;  %v1191_v55 = vadd.f32 %v1183_v22, %v1170_v49 }
 0x1ae   :  { %v1190_v39 = vadd.f32 %v1182_v25, %v1169_v35  ;;  %v1189_v41 = vadd.f32 %v1181_v38, %v1168_v45 }
 0x1b0   :  { %v1197_v42 = vrot.slane %v1190_v39, 4 }
 0x1b1   :  { %v1153_v47 = vpop.f32.mrf.mxu2 }
 0x1b2   :  { %v1164_v48 = vpop.f32.mrf.mxu3  ;;  %v1200_v43 = vsel %vm1199_vm10, %v1189_v41, %v1197_v42 }
 0x1b3   :  { %v1171_v21 = vadd.f32 %v1164_v48, %v1024_v46  ;;  %v1140_v50 = vpop.f32.mrf.mxu1  ;;  %v1127_v51 = vpop.f32.mrf.mxu0  ;;  %1204 = vst [vmem:[#allocation5] sm:$0xff] %v1200_v43 }
 0x1b5   :  { %v1192_v52 = vadd.f32 %v1184_v54, %v1171_v21 }
 0x1b7   :  { %v1198_v53 = vrot.slane %v1192_v52, 4 }
 0x1b9   :  { %v1201_v56 = vsel %vm1199_vm10, %v1191_v55, %v1198_v53 }
 0x1ba   :  { %v1166_v58 = vpop.f32.mrf.mxu3  ;;  %1205 = vst [vmem:[#allocation5 + $0x8] sm:$0xff] %v1201_v56 }
 0x1bb   :  { %1216 = dma.vmem_to_hbm [thread:$0]  %s1212_s1, 256, %s1214_s25, [#allocation4]  }
 0x1bc   :  { %1320 = dma.done.wait [#allocation4], 256  }
 0x1bd   :  { %1321 = vsyncadd [#allocation4], 4294967040 }
 0x1be   :  { %1221 = vsyncpa [#allocation3], 1 }
 0x1bf   :  { %1222 = vsyncpa [#allocation4], 1 }

</bundles_post_ra>
